<compile_context>
chip_gen: v7x
topology: tpu7x:2x2x1
jax: 0.10.0
libtpu: 0.0.40
codegen_flags: <defaults>
</compile_context>

<pallas_src>
import functools

import jax
import jax.numpy as jnp
from jax import lax
from jax.experimental import pallas as pl
from jax.experimental.pallas import tpu as pltpu

EPS = 1e-5
NEG_SLOPE = 0.2
LANE = 128


def _leaky_relu(x, slope):
    return jnp.where(x >= 0, x, slope * x)


def _round_up(x, m):
    return ((x + m - 1) // m) * m


def _pad2(a, rows, cols):
    r, c = a.shape
    return jnp.pad(a, ((0, rows - r), (0, cols - c)))


# ---------------------------------------------------------------------------
# Kernel: one tile of rows, all channels resident.
#   h   = leaky(x * scale1 + shift1)           (folded BN1)
#   h   = leaky(h @ W1_eff + b1_eff)           (Linear1 with BN2 folded in)
#   out = h @ W2 + b2                          (Linear2)
# Dropout(p=0.0) is the identity and is omitted.
# ---------------------------------------------------------------------------
def mlp_kernel(x_ref, s1_ref, t1_ref, w1_ref, b1_ref, w2_ref, b2_ref, o_ref):
    x = x_ref[...].astype(jnp.float32)

    # BN1 (eval mode, folded to scale/shift) + LeakyReLU(0.2)
    h = _leaky_relu(x * s1_ref[...] + t1_ref[...], NEG_SLOPE)

    # Linear(in -> mid) with BN2 folded into W1/b1; bf16 MXU, f32 accumulate.
    h = jnp.dot(h.astype(w1_ref.dtype), w1_ref[...],
                preferred_element_type=jnp.float32) + b1_ref[...]
    h = _leaky_relu(h, NEG_SLOPE)

    # Linear(mid -> out)
    out = jnp.dot(h.astype(w2_ref.dtype), w2_ref[...],
                  preferred_element_type=jnp.float32) + b2_ref[...]
    o_ref[...] = out.astype(o_ref.dtype)


# ---------------------------------------------------------------------------
# One-time parameter folding (pure XLA, zero per-step cost).
# ---------------------------------------------------------------------------
def fold_params(p, weight_dtype=jnp.bfloat16):
    scale1 = p["gamma1"] * lax.rsqrt(p["rv1"] + EPS)           # (1, c_in)
    shift1 = p["beta1"] - p["rm1"] * scale1                     # (1, c_in)
    scale2 = p["gamma2"] * lax.rsqrt(p["rv2"] + EPS)           # (1, c_mid)
    w1_eff = p["w1"] * scale2                                   # (c_in, c_mid)
    b1_eff = (p["b1"] - p["rm2"]) * scale2 + p["beta2"]         # (1, c_mid)
    return dict(
        scale1=scale1.astype(jnp.float32),
        shift1=shift1.astype(jnp.float32),
        w1=w1_eff.astype(weight_dtype),
        b1=b1_eff.astype(jnp.float32),
        w2=p["w2"].astype(weight_dtype),
        b2=p["b2"].astype(jnp.float32),
    )


def _build_mlp_call(n_pad, cp_in, cp_mid, cp_out, tile_m, out_dtype,
                    weight_dtype, single_buffer_consts):
    grid = (n_pad // tile_m,)

    def row_spec(cols):
        return pl.BlockSpec((tile_m, cols), lambda i: (i, 0))

    if single_buffer_consts:
        def const_spec(shape):
            # Grid-invariant operand: no need to double-buffer it.
            return pl.BlockSpec(shape, lambda i: (0, 0),
                                pipeline_mode=pl.Buffered(1))
    else:
        def const_spec(shape):
            return pl.BlockSpec(shape, lambda i: (0, 0))

    in_specs = [
        row_spec(cp_in),               # x
        const_spec((1, cp_in)),        # scale1 (folded BN1)
        const_spec((1, cp_in)),        # shift1 (folded BN1)
        const_spec((cp_in, cp_mid)),   # W1_eff (BN2 folded, bf16)
        const_spec((1, cp_mid)),       # b1_eff
        const_spec((cp_mid, cp_out)),  # W2 (bf16)
        const_spec((1, cp_out)),       # b2
    ]

    wbytes = jnp.dtype(weight_dtype).itemsize
    vmem_est = (
        2 * tile_m * cp_in * 4                              # x, double-buffered
        + 2 * tile_m * cp_out * 4                           # out, double-buffered
        + 2 * (cp_in * cp_mid + cp_mid * cp_out) * wbytes   # weights (<=2 bufs)
        + 4 * tile_m * cp_mid * 4                           # intermediates headroom
        + 8 * (cp_in + cp_mid + cp_out) * 4                 # BN/bias vectors
    )
    # Explicit scoped-VMEM budget (v7x has only 64 MiB physical per TC).
    vmem_limit = int(min(56 * 2**20, max(32 * 2**20, 2 * vmem_est)))

    return pl.pallas_call(
        mlp_kernel,
        out_shape=jax.ShapeDtypeStruct((n_pad, cp_out), out_dtype),
        grid_spec=pltpu.PrefetchScalarGridSpec(
            num_scalar_prefetch=0,
            grid=grid,
            in_specs=in_specs,
            out_specs=row_spec(cp_out),
        ),
        compiler_params=pltpu.CompilerParams(
            dimension_semantics=("parallel",),
            vmem_limit_bytes=vmem_limit,
        ),
    )


def _padded_forward(call, x, fp, n, c_out, n_pad, cp_in, cp_mid, cp_out):
    """Pad -> kernel -> slice. Jitted so padding/slicing fuse with the launch."""
    args = (
        _pad2(x, n_pad, cp_in),
        _pad2(fp["scale1"], 1, cp_in),
        _pad2(fp["shift1"], 1, cp_in),
        _pad2(fp["w1"], cp_in, cp_mid),
        _pad2(fp["b1"], 1, cp_mid),
        _pad2(fp["w2"], cp_mid, cp_out),
        _pad2(fp["b2"], 1, cp_out),
    )
    out_pad = call(*args)
    return out_pad[:n, :c_out]


def mlp_forward(x, params, *, tile_m=256, weight_dtype=jnp.bfloat16):
    """x: [N, Cin] float32. params: dict of raw (PyTorch-equivalent) MLP params."""
    n, c_in = x.shape
    c_mid = params["w1"].shape[1]
    c_out = params["w2"].shape[1]

    fp = fold_params(params, weight_dtype)

    # Lane-align every channel dim to 128; zero padding is exact (padded
    # features contribute 0 through BN/leaky/matmul; padded out cols sliced).
    cp_in = _round_up(c_in, LANE)
    cp_mid = _round_up(c_mid, LANE)
    cp_out = _round_up(c_out, LANE)

    # Row tiling: large tiles for MXU utilization, clamped to the batch.
    # Padded tail rows compute garbage that is sliced off below.
    tile_m = max(8, min(tile_m, _round_up(n, 8)))
    n_pad = _round_up(n, tile_m)

    last_err = None
    for single_buffer in (True, False):
        try:
            call = _build_mlp_call(n_pad, cp_in, cp_mid, cp_out, tile_m,
                                   x.dtype, weight_dtype, single_buffer)
            fwd = jax.jit(functools.partial(
                _padded_forward, call,
                n=n, c_out=c_out, n_pad=n_pad,
                cp_in=cp_in, cp_mid=cp_mid, cp_out=cp_out))
            return jax.block_until_ready(fwd(x, fp))
        except Exception as e:  # pl.Buffered(1) unsupported -> default buffering
            last_err = e
            if not single_buffer:
                raise
    raise last_err  # unreachable


# ---------------------------------------------------------------------------
# Parameter init (PyTorch-equivalent) and references
# ---------------------------------------------------------------------------
def init_params(key, c_in, c_mid, c_out):
    ks = jax.random.split(key, 10)
    # PyTorch Linear stores weight as (out, in); we keep it transposed (in, out).
    w1_pt = jax.random.uniform(ks[0], (c_mid, c_in), jnp.float32,
                               -1.0 / jnp.sqrt(c_in), 1.0 / jnp.sqrt(c_in))
    b1 = jax.random.uniform(ks[1], (1, c_mid), jnp.float32,
                            -1.0 / jnp.sqrt(c_in), 1.0 / jnp.sqrt(c_in))
    w2_pt = jax.random.uniform(ks[2], (c_out, c_mid), jnp.float32,
                               -1.0 / jnp.sqrt(c_mid), 1.0 / jnp.sqrt(c_mid))
    b2 = jax.random.uniform(ks[3], (1, c_out), jnp.float32,
                            -1.0 / jnp.sqrt(c_mid), 1.0 / jnp.sqrt(c_mid))
    return dict(
        gamma1=jax.random.uniform(ks[4], (1, c_in), jnp.float32, 0.5, 1.5),
        beta1=jax.random.normal(ks[5], (1, c_in), jnp.float32) * 0.1,
        rm1=jax.random.normal(ks[6], (1, c_in), jnp.float32) * 0.1,
        rv1=jax.random.uniform(ks[7], (1, c_in), jnp.float32, 0.5, 1.5),
        w1=jnp.transpose(w1_pt),
        b1=b1,
        gamma2=jax.random.uniform(ks[8], (1, c_mid), jnp.float32, 0.5, 1.5),
        beta2=jax.random.normal(ks[9], (1, c_mid), jnp.float32) * 0.1,
        rm2=jnp.zeros((1, c_mid), jnp.float32),
        rv2=jnp.ones((1, c_mid), jnp.float32),
        w2=jnp.transpose(w2_pt),
        b2=b2,
    )


def mlp_reference_f32(x, p):
    """Unfolded, full-f32 PyTorch-style eval-mode forward."""
    h = (x - p["rm1"]) * (p["gamma1"] * lax.rsqrt(p["rv1"] + EPS)) + p["beta1"]
    h = jnp.where(h >= 0, h, NEG_SLOPE * h)
    h = h @ p["w1"] + p["b1"]
    h = (h - p["rm2"]) * (p["gamma2"] * lax.rsqrt(p["rv2"] + EPS)) + p["beta2"]
    h = jnp.where(h >= 0, h, NEG_SLOPE * h)
    return h @ p["w2"] + p["b2"]


def mlp_reference_folded(x, p, weight_dtype=jnp.bfloat16):
    """Reference with the same folding / bf16 matmul arithmetic as the kernel."""
    fp = fold_params(p, weight_dtype)
    pre = x * fp["scale1"] + fp["shift1"]
    h = jnp.where(pre >= 0, pre, NEG_SLOPE * pre)
    h = jnp.dot(h.astype(weight_dtype), fp["w1"],
                preferred_element_type=jnp.float32) + fp["b1"]
    h = jnp.where(h >= 0, h, NEG_SLOPE * h)
    return jnp.dot(h.astype(weight_dtype), fp["w2"],
                   preferred_element_type=jnp.float32) + fp["b2"]


if __name__ == "__main__":
    key = jax.random.PRNGKey(0)
    k_x, k_p = jax.random.split(key)

    N, C_IN, C_MID, C_OUT = 64, 32, 64, 16
    x = jax.random.normal(k_x, (N, C_IN), jnp.float32)
    params = init_params(k_p, C_IN, C_MID, C_OUT)

    out = mlp_forward(x, params, tile_m=256)
    out = jax.block_until_ready(out)
    assert out.shape == (N, C_OUT)

    # Tight check against a reference using identical folded/bf16 arithmetic.
    ref_same = mlp_reference_folded(x, params, jnp.bfloat16)
    assert jnp.allclose(out, ref_same, atol=1e-2, rtol=1e-2)

    # Loose semantic check against the unfolded full-f32 PyTorch-style math
    # (bf16 weights introduce ~1e-2-level deviation).
    ref_f32 = mlp_reference_f32(x, params)
    assert jnp.allclose(out, ref_f32, atol=5e-2, rtol=5e-2)

    print("KERNEL_OK")
</pallas_src>

<mosaic_0001>
module attributes {stable_mosaic.version = 11 : i64} {
  func.func @mlp_kernel(%arg0: i32, %arg1: memref<64x128xf32, #tpu.memory_space<vmem>>, %arg2: memref<1x128xf32, #tpu.memory_space<vmem>>, %arg3: memref<1x128xf32, #tpu.memory_space<vmem>>, %arg4: memref<128x128xbf16, #tpu.memory_space<vmem>>, %arg5: memref<1x128xf32, #tpu.memory_space<vmem>>, %arg6: memref<128x128xbf16, #tpu.memory_space<vmem>>, %arg7: memref<1x128xf32, #tpu.memory_space<vmem>>, %arg8: memref<64x128xf32, #tpu.memory_space<vmem>>) attributes {dimension_semantics = [#tpu.dimension_semantics<parallel>], iteration_bounds = array<i64: 1>, scalar_prefetch = 0 : i64, scratch_operands = 0 : i64, tpu.core_type = #tpu.core_type<tc>, window_params = [{transform_indices = @transform_0, window_bounds = array<i64: 64, 128>}, {pipeline_mode = #tpu.pipeline_mode<synchronous>, transform_indices = @transform_1, window_bounds = array<i64: 1, 128>}, {pipeline_mode = #tpu.pipeline_mode<synchronous>, transform_indices = @transform_2, window_bounds = array<i64: 1, 128>}, {pipeline_mode = #tpu.pipeline_mode<synchronous>, transform_indices = @transform_3, window_bounds = array<i64: 128, 128>}, {pipeline_mode = #tpu.pipeline_mode<synchronous>, transform_indices = @transform_4, window_bounds = array<i64: 1, 128>}, {pipeline_mode = #tpu.pipeline_mode<synchronous>, transform_indices = @transform_5, window_bounds = array<i64: 128, 128>}, {pipeline_mode = #tpu.pipeline_mode<synchronous>, transform_indices = @transform_6, window_bounds = array<i64: 1, 128>}, {transform_indices = @transform_7, window_bounds = array<i64: 64, 128>}]} {
    %c0 = arith.constant 0 : index
    %c0_0 = arith.constant 0 : index
    %0 = vector.load %arg1[%c0, %c0_0] : memref<64x128xf32, #tpu.memory_space<vmem>>, vector<64x128xf32>
    %c0_1 = arith.constant 0 : index
    %c0_2 = arith.constant 0 : index
    %1 = vector.load %arg2[%c0_1, %c0_2] : memref<1x128xf32, #tpu.memory_space<vmem>>, vector<1x128xf32>
    %2 = vector.broadcast %1 : vector<1x128xf32> to vector<64x128xf32>
    %3 = arith.mulf %0, %2 : vector<64x128xf32>
    %c0_3 = arith.constant 0 : index
    %c0_4 = arith.constant 0 : index
    %4 = vector.load %arg3[%c0_3, %c0_4] : memref<1x128xf32, #tpu.memory_space<vmem>>, vector<1x128xf32>
    %5 = vector.broadcast %4 : vector<1x128xf32> to vector<64x128xf32>
    %6 = arith.addf %3, %5 : vector<64x128xf32>
    %cst = arith.constant 0.000000e+00 : f32
    %7 = vector.broadcast %cst : f32 to vector<64x128xf32>
    %8 = arith.cmpf oge, %6, %7 : vector<64x128xf32>
    %cst_5 = arith.constant 2.000000e-01 : f32
    %9 = vector.broadcast %cst_5 : f32 to vector<64x128xf32>
    %10 = arith.mulf %9, %6 : vector<64x128xf32>
    %11 = arith.select %8, %6, %10 : vector<64x128xi1>, vector<64x128xf32>
    %12 = arith.truncf %11 : vector<64x128xf32> to vector<64x128xbf16>
    %c0_6 = arith.constant 0 : index
    %c0_7 = arith.constant 0 : index
    %13 = vector.load %arg4[%c0_6, %c0_7] : memref<128x128xbf16, #tpu.memory_space<vmem>>, vector<128x128xbf16>
    %cst_8 = arith.constant dense<0.000000e+00> : vector<64x128xf32>
    %14 = tpu.matmul %12, %13, %cst_8 {dimension_numbers = #tpu.dot_dimension_numbers<[1], [0], [0], [1], [0, 0, 1, 1], [], []>} : vector<64x128xbf16>, vector<128x128xbf16>, vector<64x128xf32> -> vector<64x128xf32>
    %c0_9 = arith.constant 0 : index
    %c0_10 = arith.constant 0 : index
    %15 = vector.load %arg5[%c0_9, %c0_10] : memref<1x128xf32, #tpu.memory_space<vmem>>, vector<1x128xf32>
    %16 = vector.broadcast %15 : vector<1x128xf32> to vector<64x128xf32>
    %17 = arith.addf %14, %16 : vector<64x128xf32>
    %cst_11 = arith.constant 0.000000e+00 : f32
    %18 = vector.broadcast %cst_11 : f32 to vector<64x128xf32>
    %19 = arith.cmpf oge, %17, %18 : vector<64x128xf32>
    %cst_12 = arith.constant 2.000000e-01 : f32
    %20 = vector.broadcast %cst_12 : f32 to vector<64x128xf32>
    %21 = arith.mulf %20, %17 : vector<64x128xf32>
    %22 = arith.select %19, %17, %21 : vector<64x128xi1>, vector<64x128xf32>
    %23 = arith.truncf %22 : vector<64x128xf32> to vector<64x128xbf16>
    %c0_13 = arith.constant 0 : index
    %c0_14 = arith.constant 0 : index
    %24 = vector.load %arg6[%c0_13, %c0_14] : memref<128x128xbf16, #tpu.memory_space<vmem>>, vector<128x128xbf16>
    %cst_15 = arith.constant dense<0.000000e+00> : vector<64x128xf32>
    %25 = tpu.matmul %23, %24, %cst_15 {dimension_numbers = #tpu.dot_dimension_numbers<[1], [0], [0], [1], [0, 0, 1, 1], [], []>} : vector<64x128xbf16>, vector<128x128xbf16>, vector<64x128xf32> -> vector<64x128xf32>
    %c0_16 = arith.constant 0 : index
    %c0_17 = arith.constant 0 : index
    %26 = vector.load %arg7[%c0_16, %c0_17] : memref<1x128xf32, #tpu.memory_space<vmem>>, vector<1x128xf32>
    %27 = vector.broadcast %26 : vector<1x128xf32> to vector<64x128xf32>
    %28 = arith.addf %25, %27 : vector<64x128xf32>
    %c0_18 = arith.constant 0 : index
    %c0_19 = arith.constant 0 : index
    %29 = vector.load %arg8[%c0_18, %c0_19] : memref<64x128xf32, #tpu.memory_space<vmem>>, vector<64x128xf32>
    tpu.vector_store %arg8[%c0_18, %c0_19], %28 {strides = array<i32>} : memref<64x128xf32, #tpu.memory_space<vmem>>, vector<64x128xf32>,
    return
  }
  func.func @transform_0(%arg0: i32) -> (i32, i32) {
    %c0_i32 = arith.constant 0 : i32
    %c0_i32_0 = arith.constant 0 : i32
    return %arg0, %c0_i32 : i32, i32
  }
  func.func @transform_1(%arg0: i32) -> (i32, i32) {
    %c0_i32 = arith.constant 0 : i32
    %c0_i32_0 = arith.constant 0 : i32
    %c0_i32_1 = arith.constant 0 : i32
    return %c0_i32, %c0_i32_0 : i32, i32
  }
  func.func @transform_2(%arg0: i32) -> (i32, i32) {
    %c0_i32 = arith.constant 0 : i32
    %c0_i32_0 = arith.constant 0 : i32
    %c0_i32_1 = arith.constant 0 : i32
    return %c0_i32, %c0_i32_0 : i32, i32
  }
  func.func @transform_3(%arg0: i32) -> (i32, i32) {
    %c0_i32 = arith.constant 0 : i32
    %c0_i32_0 = arith.constant 0 : i32
    %c0_i32_1 = arith.constant 0 : i32
    return %c0_i32, %c0_i32_0 : i32, i32
  }
  func.func @transform_4(%arg0: i32) -> (i32, i32) {
    %c0_i32 = arith.constant 0 : i32
    %c0_i32_0 = arith.constant 0 : i32
    %c0_i32_1 = arith.constant 0 : i32
    return %c0_i32, %c0_i32_0 : i32, i32
  }
  func.func @transform_5(%arg0: i32) -> (i32, i32) {
    %c0_i32 = arith.constant 0 : i32
    %c0_i32_0 = arith.constant 0 : i32
    %c0_i32_1 = arith.constant 0 : i32
    return %c0_i32, %c0_i32_0 : i32, i32
  }
  func.func @transform_6(%arg0: i32) -> (i32, i32) {
    %c0_i32 = arith.constant 0 : i32
    %c0_i32_0 = arith.constant 0 : i32
    %c0_i32_1 = arith.constant 0 : i32
    return %c0_i32, %c0_i32_0 : i32, i32
  }
  func.func @transform_7(%arg0: i32) -> (i32, i32) {
    %c0_i32 = arith.constant 0 : i32
    %c0_i32_0 = arith.constant 0 : i32
    return %arg0, %c0_i32 : i32, i32
  }
}

module attributes {stable_mosaic.version = 11 : i64} {
  func.func @mlp_kernel(%arg0: i32, %arg1: memref<64x128xf32, #tpu.memory_space<vmem>>, %arg2: memref<1x128xf32, #tpu.memory_space<vmem>>, %arg3: memref<1x128xf32, #tpu.memory_space<vmem>>, %arg4: memref<128x128xbf16, #tpu.memory_space<vmem>>, %arg5: memref<1x128xf32, #tpu.memory_space<vmem>>, %arg6: memref<128x128xbf16, #tpu.memory_space<vmem>>, %arg7: memref<1x128xf32, #tpu.memory_space<vmem>>, %arg8: memref<64x128xf32, #tpu.memory_space<vmem>>) attributes {dimension_semantics = [#tpu.dimension_semantics<parallel>], iteration_bounds = array<i64: 1>, scalar_prefetch = 0 : i64, scratch_operands = 0 : i64, tpu.core_type = #tpu.core_type<tc>, window_params = [{transform_indices = @transform_0, window_bounds = array<i64: 64, 128>}, {pipeline_mode = #tpu.pipeline_mode<synchronous>, transform_indices = @transform_1, window_bounds = array<i64: 1, 128>}, {pipeline_mode = #tpu.pipeline_mode<synchronous>, transform_indices = @transform_2, window_bounds = array<i64: 1, 128>}, {pipeline_mode = #tpu.pipeline_mode<synchronous>, transform_indices = @transform_3, window_bounds = array<i64: 128, 128>}, {pipeline_mode = #tpu.pipeline_mode<synchronous>, transform_indices = @transform_4, window_bounds = array<i64: 1, 128>}, {pipeline_mode = #tpu.pipeline_mode<synchronous>, transform_indices = @transform_5, window_bounds = array<i64: 128, 128>}, {pipeline_mode = #tpu.pipeline_mode<synchronous>, transform_indices = @transform_6, window_bounds = array<i64: 1, 128>}, {transform_indices = @transform_7, window_bounds = array<i64: 64, 128>}]} {
    %c0 = arith.constant 0 : index
    %c0_0 = arith.constant 0 : index
    %0 = vector.load %arg1[%c0, %c0_0] : memref<64x128xf32, #tpu.memory_space<vmem>>, vector<64x128xf32>
    %c0_1 = arith.constant 0 : index
    %c0_2 = arith.constant 0 : index
    %1 = vector.load %arg2[%c0_1, %c0_2] : memref<1x128xf32, #tpu.memory_space<vmem>>, vector<1x128xf32>
    %2 = vector.broadcast %1 : vector<1x128xf32> to vector<64x128xf32>
    %3 = arith.mulf %0, %2 : vector<64x128xf32>
    %c0_3 = arith.constant 0 : index
    %c0_4 = arith.constant 0 : index
    %4 = vector.load %arg3[%c0_3, %c0_4] : memref<1x128xf32, #tpu.memory_space<vmem>>, vector<1x128xf32>
    %5 = vector.broadcast %4 : vector<1x128xf32> to vector<64x128xf32>
    %6 = arith.addf %3, %5 : vector<64x128xf32>
    %cst = arith.constant 0.000000e+00 : f32
    %7 = vector.broadcast %cst : f32 to vector<64x128xf32>
    %8 = arith.cmpf oge, %6, %7 : vector<64x128xf32>
    %cst_5 = arith.constant 2.000000e-01 : f32
    %9 = vector.broadcast %cst_5 : f32 to vector<64x128xf32>
    %10 = arith.mulf %9, %6 : vector<64x128xf32>
    %11 = arith.select %8, %6, %10 : vector<64x128xi1>, vector<64x128xf32>
    %12 = arith.truncf %11 : vector<64x128xf32> to vector<64x128xbf16>
    %c0_6 = arith.constant 0 : index
    %c0_7 = arith.constant 0 : index
    %13 = vector.load %arg4[%c0_6, %c0_7] : memref<128x128xbf16, #tpu.memory_space<vmem>>, vector<128x128xbf16>
    %cst_8 = arith.constant dense<0.000000e+00> : vector<64x128xf32>
    %14 = tpu.matmul %12, %13, %cst_8 {dimension_numbers = #tpu.dot_dimension_numbers<[1], [0], [0], [1], [0, 0, 1, 1], [], []>} : vector<64x128xbf16>, vector<128x128xbf16>, vector<64x128xf32> -> vector<64x128xf32>
    %c0_9 = arith.constant 0 : index
    %c0_10 = arith.constant 0 : index
    %15 = vector.load %arg5[%c0_9, %c0_10] : memref<1x128xf32, #tpu.memory_space<vmem>>, vector<1x128xf32>
    %16 = vector.broadcast %15 : vector<1x128xf32> to vector<64x128xf32>
    %17 = arith.addf %14, %16 : vector<64x128xf32>
    %cst_11 = arith.constant 0.000000e+00 : f32
    %18 = vector.broadcast %cst_11 : f32 to vector<64x128xf32>
    %19 = arith.cmpf oge, %17, %18 : vector<64x128xf32>
    %cst_12 = arith.constant 2.000000e-01 : f32
    %20 = vector.broadcast %cst_12 : f32 to vector<64x128xf32>
    %21 = arith.mulf %20, %17 : vector<64x128xf32>
    %22 = arith.select %19, %17, %21 : vector<64x128xi1>, vector<64x128xf32>
    %23 = arith.truncf %22 : vector<64x128xf32> to vector<64x128xbf16>
    %c0_13 = arith.constant 0 : index
    %c0_14 = arith.constant 0 : index
    %24 = vector.load %arg6[%c0_13, %c0_14] : memref<128x128xbf16, #tpu.memory_space<vmem>>, vector<128x128xbf16>
    %cst_15 = arith.constant dense<0.000000e+00> : vector<64x128xf32>
    %25 = tpu.matmul %23, %24, %cst_15 {dimension_numbers = #tpu.dot_dimension_numbers<[1], [0], [0], [1], [0, 0, 1, 1], [], []>} : vector<64x128xbf16>, vector<128x128xbf16>, vector<64x128xf32> -> vector<64x128xf32>
    %c0_16 = arith.constant 0 : index
    %c0_17 = arith.constant 0 : index
    %26 = vector.load %arg7[%c0_16, %c0_17] : memref<1x128xf32, #tpu.memory_space<vmem>>, vector<1x128xf32>
    %27 = vector.broadcast %26 : vector<1x128xf32> to vector<64x128xf32>
    %28 = arith.addf %25, %27 : vector<64x128xf32>
    %c0_18 = arith.constant 0 : index
    %c0_19 = arith.constant 0 : index
    %29 = vector.load %arg8[%c0_18, %c0_19] : memref<64x128xf32, #tpu.memory_space<vmem>>, vector<64x128xf32>
    tpu.vector_store %arg8[%c0_18, %c0_19], %28 {strides = array<i32>} : memref<64x128xf32, #tpu.memory_space<vmem>>, vector<64x128xf32>,
    return
  }
  func.func @transform_0(%arg0: i32) -> (i32, i32) {
    %c0_i32 = arith.constant 0 : i32
    %c0_i32_0 = arith.constant 0 : i32
    return %arg0, %c0_i32 : i32, i32
  }
  func.func @transform_1(%arg0: i32) -> (i32, i32) {
    %c0_i32 = arith.constant 0 : i32
    %c0_i32_0 = arith.constant 0 : i32
    %c0_i32_1 = arith.constant 0 : i32
    return %c0_i32, %c0_i32_0 : i32, i32
  }
  func.func @transform_2(%arg0: i32) -> (i32, i32) {
    %c0_i32 = arith.constant 0 : i32
    %c0_i32_0 = arith.constant 0 : i32
    %c0_i32_1 = arith.constant 0 : i32
    return %c0_i32, %c0_i32_0 : i32, i32
  }
  func.func @transform_3(%arg0: i32) -> (i32, i32) {
    %c0_i32 = arith.constant 0 : i32
    %c0_i32_0 = arith.constant 0 : i32
    %c0_i32_1 = arith.constant 0 : i32
    return %c0_i32, %c0_i32_0 : i32, i32
  }
  func.func @transform_4(%arg0: i32) -> (i32, i32) {
    %c0_i32 = arith.constant 0 : i32
    %c0_i32_0 = arith.constant 0 : i32
    %c0_i32_1 = arith.constant 0 : i32
    return %c0_i32, %c0_i32_0 : i32, i32
  }
  func.func @transform_5(%arg0: i32) -> (i32, i32) {
    %c0_i32 = arith.constant 0 : i32
    %c0_i32_0 = arith.constant 0 : i32
    %c0_i32_1 = arith.constant 0 : i32
    return %c0_i32, %c0_i32_0 : i32, i32
  }
  func.func @transform_6(%arg0: i32) -> (i32, i32) {
    %c0_i32 = arith.constant 0 : i32
    %c0_i32_0 = arith.constant 0 : i32
    %c0_i32_1 = arith.constant 0 : i32
    return %c0_i32, %c0_i32_0 : i32, i32
  }
  func.func @transform_7(%arg0: i32) -> (i32, i32) {
    %c0_i32 = arith.constant 0 : i32
    %c0_i32_0 = arith.constant 0 : i32
    return %arg0, %c0_i32 : i32, i32
  }
}

</mosaic_0001>

<bundles_post_ra>
// kernel: _padded_forward.1
= control target key start
LH: loop header
LB: loop body
LE: loop exit
PB: predicated region body
PF: predicated region fallthrough
CT: control target
= control target key end

     0   :  { %s671_s3 = inlined_call_operand.vmem [shape: bf16[128,128], index: 3, kind: input, shape index: {}]   ;;  %s672_s0 = inlined_call_operand.vmem [shape: f32[64,128], index: 0, kind: input, shape index: {}]   ;;  %s673_s1 = inlined_call_operand.vmem [shape: f32[1,128], index: 1, kind: input, shape index: {}]   ;;  %s674_s2 = inlined_call_operand.vmem [shape: f32[1,128], index: 2, kind: input, shape index: {}]   ;;  %s675_s5 = inlined_call_operand.vmem [shape: bf16[128,128], index: 5, kind: input, shape index: {}]   ;;  %s676_s4 = inlined_call_operand.vmem [shape: f32[1,128], index: 4, kind: input, shape index: {}]   ;;  %s677_s6 = inlined_call_operand.vmem [shape: f32[1,128], index: 6, kind: input, shape index: {}]   ;;  %s678_s7 = inlined_call_operand.vmem [shape: f32[64,128], index: 7, kind: output, shape index: {}]  }
   0x1   :  { %v497_v0 = vld [vmem:[%s671_s3] sm:$0xff]   ;;  %v498_v1 = vld [vmem:[%s671_s3 + $0x8] sm:$0xff]   ;;  %v499_v2 = vld [vmem:[%s671_s3 + $0x10] sm:$0xff]  }
   0x2   :  { %449 = vmatprep.subr.bf16.mxu0 %v497_v0  ;;  %v500_v3 = vld [vmem:[%s671_s3 + $0x18] sm:$0xff]   ;;  %v27_v4 = vld [vmem:[%s672_s0] sm:$0xff]  ;;  %v28_v5 = vld [vmem:[%s672_s0 + $0x8] sm:$0xff] }
   0x3   :  { %450 = vmatpush3.bf16.msra.mxu0 %v497_v0  ;;  %v405_v6 = vld [vmem:[%s673_s1] ss:$0 sm:$0xff]  ;;  %v29_v11 = vld [vmem:[%s672_s0 + $0x10] sm:$0xff]  ;;  %v30_v12 = vld [vmem:[%s672_s0 + $0x18] sm:$0xff] }
   0x4   :  { %451 = vmatprep.subr.bf16.mxu0 %v498_v1  ;;  %v42_v7 = vmul.f32 %v405_v6, %v27_v4  ;;  %v43_v8 = vmul.f32 %v405_v6, %v28_v5  ;;  %v577_v9 = vld [vmem:[%s674_s2] ss:$0 sm:$0xff]  ;;  %v32_v16 = vld [vmem:[%s672_s0 + $0x28] sm:$0xff]  ;;  %v44_v22 = vmul.f32 %v405_v6, %v29_v11  ;;  %v45_v23 = vmul.f32 %v405_v6, %v30_v12  ;;  %v503_v29 = vld [vmem:[%s671_s3 + $0x30] sm:$0xff]  }
   0x5   :  { %v501_v10 = vld [vmem:[%s671_s3 + $0x20] sm:$0xff]   ;;  %v506_v24 = vld [vmem:[%s675_s5 + $0x8] sm:$0xff]   ;;  %v47_v28 = vmul.f32 %v405_v6, %v32_v16  ;;  %v507_v30 = vld [vmem:[%s675_s5 + $0x10] sm:$0xff]  }
   0x6   :  { %v57_v13 = vadd.f32 %v577_v9, %v42_v7  ;;  %v58_v14 = vadd.f32 %v577_v9, %v43_v8  ;;  %v31_v15 = vld [vmem:[%s672_s0 + $0x20] sm:$0xff]  ;;  %v502_v25 = vld [vmem:[%s671_s3 + $0x28] sm:$0xff]   ;;  %v59_v31 = vadd.f32 %v577_v9, %v44_v22  ;;  %v60_v32 = vadd.f32 %v577_v9, %v45_v23  ;;  %v33_v35 = vld [vmem:[%s672_s0 + $0x30] sm:$0xff] }
   0x7   :  { %452 = vmatpush3.bf16.msra.mxu0 %v498_v1  ;;  %v505_v17 = vld [vmem:[%s675_s5] sm:$0xff]   ;;  %v46_v27 = vmul.f32 %v405_v6, %v31_v15  ;;  %v62_v34 = vadd.f32 %v577_v9, %v47_v28  ;;  %v34_v36 = vld [vmem:[%s672_s0 + $0x38] sm:$0xff]  ;;  %v48_v41 = vmul.f32 %v405_v6, %v33_v35  ;;  %v510_v59 = vld [vmem:[%s675_s5 + $0x28] sm:$0xff]  }
   0x8   :  { %453 = vmatprep.subr.bf16.mxu0 %v499_v2  ;;  %vm65_vm0 = vcmp.ge.f32.partialorder %v57_v13, 0.0  ;;  %vm66_vm1 = vcmp.ge.f32.partialorder %v58_v14, 0.0  ;;  %v73_v18 = vmul.f32 0.2, %v57_v13  ;;  %v74_v19 = vmul.f32 0.2, %v58_v14  ;;  %473 = vmatprep.subr.bf16.mxu1 %v505_v17 }
   0x9   :  { %474 = vmatpush3.bf16.msra.mxu1 %v505_v17  ;;  %v61_v33 = vadd.f32 %v577_v9, %v46_v27  ;;  %v508_v37 = vld [vmem:[%s675_s5 + $0x18] sm:$0xff]   ;;  %v75_v39 = vmul.f32 0.2, %v59_v31  ;;  %v76_v40 = vmul.f32 0.2, %v60_v32  ;;  %v49_v42 = vmul.f32 %v405_v6, %v34_v36  ;;  %v509_v45 = vld [vmem:[%s675_s5 + $0x20] sm:$0xff]  }
   0xa   :  { %v81_v20 = vsel %vm65_vm0, %v57_v13, %v73_v18  ;;  %v82_v21 = vsel %vm66_vm1, %v58_v14, %v74_v19  ;;  %475 = vmatprep.subr.bf16.mxu1 %v506_v24  ;;  %v504_v38 = vld [vmem:[%s671_s3 + $0x38] sm:$0xff]   ;;  %vm67_vm2 = vcmp.ge.f32.partialorder %v59_v31, 0.0  ;;  %vm68_vm3 = vcmp.ge.f32.partialorder %v60_v32, 0.0  ;;  %v511_v60 = vld [vmem:[%s675_s5 + $0x30] sm:$0xff]   ;;  %v407_v62 = vld [vmem:[%s676_s4] ss:$0 sm:$0xff] }
   0xb   :  { %454 = vmatpush3.bf16.msra.mxu0 %v499_v2  ;;  %v89_v26 = vpack.c.bf16 %v82_v21, %v81_v20  ;;  %v77_v43 = vmul.f32 0.2, %v61_v33  ;;  %v78_v44 = vmul.f32 0.2, %v62_v34  ;;  %vm69_vm4 = vcmp.ge.f32.partialorder %v61_v33, 0.0  ;;  %v512_v61 = vld [vmem:[%s675_s5 + $0x38] sm:$0xff]  }
   0xc   :  { %455 = vmatprep.subr.bf16.mxu0 %v500_v3  ;;  %vm70_vm5 = vcmp.ge.f32.partialorder %v62_v34, 0.0  ;;  %v83_v46 = vsel %vm67_vm2, %v59_v31, %v75_v39  ;;  %v84_v47 = vsel %vm68_vm3, %v60_v32, %v76_v40  ;;  %v63_v48 = vadd.f32 %v577_v9, %v48_v41  ;;  %v416_v35 = vld [vmem:[%s677_s6] ss:$0 sm:$0xff] }
   0xd   :  { %465 = vmatprep.mubr.bf16.mxu0 %v89_v26  ;;  %476 = vmatpush3.bf16.msra.mxu1 %v506_v24  ;;  %v64_v49 = vadd.f32 %v577_v9, %v49_v42  ;;  %v85_v50 = vsel %vm69_vm4, %v61_v33, %v77_v43  ;;  %v86_v51 = vsel %vm70_vm5, %v62_v34, %v78_v44 }
   0xe   :  { %477 = vmatprep.subr.bf16.mxu1 %v507_v30  ;;  %v90_v52 = vpack.c.bf16 %v84_v47, %v83_v46  ;;  %v91_v53 = vpack.c.bf16 %v86_v51, %v85_v50  ;;  %v79_v54 = vmul.f32 0.2, %v63_v48  ;;  %vm71_vm6 = vcmp.ge.f32.partialorder %v63_v48, 0.0 }
   0xf   :  { %456 = vmatpush3.bf16.msra.mxu0 %v500_v3  ;;  %v80_v55 = vmul.f32 0.2, %v64_v49  ;;  %vm72_vm7 = vcmp.ge.f32.partialorder %v64_v49, 0.0 }
  0x10   :  { %457 = vmatprep.subr.bf16.mxu0 %v501_v10  ;;  %v87_v56 = vsel %vm71_vm6, %v63_v48, %v79_v54 }
  0x11   :  { %478 = vmatpush3.bf16.msra.mxu1 %v507_v30  ;;  %v88_v57 = vsel %vm72_vm7, %v64_v49, %v80_v55 }
  0x12   :  { %479 = vmatprep.subr.bf16.mxu1 %v508_v37  ;;  %v92_v58 = vpack.c.bf16 %v88_v57, %v87_v56 }
  0x13   :  { %458 = vmatpush3.bf16.msra.mxu0 %v501_v10 }
  0x14   :  { %459 = vmatprep.subr.bf16.mxu0 %v502_v25 }
  0x15   :  { %480 = vmatpush3.bf16.msra.mxu1 %v508_v37 }
  0x16   :  { %481 = vmatprep.subr.bf16.mxu1 %v509_v45 }
  0x17   :  { %460 = vmatpush3.bf16.msra.mxu0 %v502_v25 }
  0x18   :  { %461 = vmatprep.subr.bf16.mxu0 %v503_v29 }
  0x19   :  { %482 = vmatpush3.bf16.msra.mxu1 %v509_v45 }
  0x1a   :  { %483 = vmatprep.subr.bf16.mxu1 %v510_v59 }
  0x1b   :  { %462 = vmatpush3.bf16.msra.mxu0 %v503_v29 }
  0x1c   :  { %463 = vmatprep.subr.bf16.mxu0 %v504_v38 }
  0x1d   :  { %484 = vmatpush3.bf16.msra.mxu1 %v510_v59 }
  0x1e   :  { %485 = vmatprep.subr.bf16.mxu1 %v511_v60 }
  0x1f   :  { %464 = vmatpush3.bf16.msra.mxu0 %v504_v38 }
  0x21   :  { %486 = vmatpush3.bf16.msra.mxu1 %v511_v60 }
  0x22   :  { %466 = vmatmul.mubr.bf16.vlgmr.msra.gmra.mrb[0].mxu0 %v90_v52  ;;  %487 = vmatprep.subr.bf16.mxu1 %v512_v61 }
  0x23   :  { %469 = vmatprep.mubr.bf16.mxu0 %v91_v53 }
  0x25   :  { %488 = vmatpush3.bf16.msra.mxu1 %v512_v61 }
  0x2a   :  { %470 = vmatmul.mubr.bf16.gmra.mrb[4].mxu0 %v92_v58 }
  0xf5   :  { %v467_v63 = vpop.f32.mrb[0].mxu0 }
  0xf6   :  { %v207_v0 = vadd.f32 %v467_v63, %v407_v62  ;;  %v198_v1 = vpop.f32.mrb[1].mxu0 }
  0xf7   :  { %v199_v2 = vadd.f32 %v407_v62, %v198_v1  ;;  %v468_v3 = vpop.f32.mrb[2].mxu0 }
  0xf8   :  { %v239_v4 = vmul.f32 0.2, %v207_v0  ;;  %v210_v5 = vadd.f32 %v468_v3, %v407_v62  ;;  %v201_v6 = vpop.f32.mrb[3].mxu0  ;;  %vm231_vm8 = vcmp.ge.f32.partialorder %v207_v0, 0.0 }
  0xf9   :  { %v237_v7 = vmul.f32 0.2, %v199_v2  ;;  %v202_v8 = vadd.f32 %v407_v62, %v201_v6  ;;  %vm229_vm10 = vcmp.ge.f32.partialorder %v199_v2, 0.0 }
  0xfa   :  { %vm232_vm9 = vcmp.ge.f32.partialorder %v210_v5, 0.0  ;;  %v240_v9 = vmul.f32 0.2, %v210_v5  ;;  %v247_v11 = vsel %vm231_vm8, %v207_v0, %v239_v4 }
  0xfb   :  { %v238_v10 = vmul.f32 0.2, %v202_v8  ;;  %vm230_vm11 = vcmp.ge.f32.partialorder %v202_v8, 0.0  ;;  %v245_v14 = vsel %vm229_vm10, %v199_v2, %v237_v7 }
  0xfc   :  { %v248_v12 = vsel %vm232_vm9, %v210_v5, %v240_v9 }
  0xfd   :  { %v471_v13 = vpop.f32.mrb[4].mxu0  ;;  %v246_v15 = vsel %vm230_vm11, %v202_v8, %v238_v10  ;;  %v254_v16 = vpack.c.bf16 %v248_v12, %v247_v11 }
  0xfe   :  { %v223_v17 = vadd.f32 %v471_v13, %v407_v62  ;;  %v214_v18 = vpop.f32.mrb[5].mxu0  ;;  %v253_v19 = vpack.c.bf16 %v246_v15, %v245_v14 }
  0xff   :  { %v215_v20 = vadd.f32 %v407_v62, %v214_v18  ;;  %v472_v21 = vpop.f32.mrb[6].mxu0 }
 0x100   :  { %v243_v22 = vmul.f32 0.2, %v223_v17  ;;  %v226_v23 = vadd.f32 %v472_v21, %v407_v62  ;;  %v217_v24 = vpop.f32.mrb[7].mxu0  ;;  %489 = vmatprep.mubr.bf16.mxu1 %v253_v19  ;;  %vm235_vm12 = vcmp.ge.f32.partialorder %v223_v17, 0.0 }
 0x101   :  { %v241_v25 = vmul.f32 0.2, %v215_v20  ;;  %v218_v26 = vadd.f32 %v407_v62, %v217_v24  ;;  %490 = vmatmul.mubr.bf16.vlgmr.msra.gmra.mrb[0].mxu1 %v254_v16  ;;  %vm233_vm13 = vcmp.ge.f32.partialorder %v215_v20, 0.0 }
 0x102   :  { %vm236_vm14 = vcmp.ge.f32.partialorder %v226_v23, 0.0  ;;  %v244_v27 = vmul.f32 0.2, %v226_v23  ;;  %v251_v29 = vsel %vm235_vm12, %v223_v17, %v243_v22 }
 0x103   :  { %vm234_vm15 = vcmp.ge.f32.partialorder %v218_v26, 0.0  ;;  %v242_v28 = vmul.f32 0.2, %v218_v26  ;;  %v249_v31 = vsel %vm233_vm13, %v215_v20, %v241_v25 }
 0x104   :  { %v252_v30 = vsel %vm236_vm14, %v226_v23, %v244_v27 }
 0x105   :  { %v250_v32 = vsel %vm234_vm15, %v218_v26, %v242_v28  ;;  %v256_v33 = vpack.c.bf16 %v252_v30, %v251_v29 }
 0x106   :  { %v255_v34 = vpack.c.bf16 %v250_v32, %v249_v31 }
 0x108   :  { %493 = vmatprep.mubr.bf16.mxu1 %v255_v34 }
 0x109   :  { %494 = vmatmul.mubr.bf16.gmra.mrb[4].mxu1 %v256_v33 }
 0x1d4   :  { %v491_v36 = vpop.f32.mrb[0].mxu1 }
 0x1d5   :  { %v371_v37 = vadd.f32 %v491_v36, %v416_v35  ;;  %v362_v38 = vpop.f32.mrb[1].mxu1 }
 0x1d6   :  { %v363_v39 = vadd.f32 %v416_v35, %v362_v38  ;;  %v492_v40 = vpop.f32.mrb[2].mxu1 }
 0x1d7   :  { %395 = vst [vmem:[%s678_s7 + $0x10] sm:$0xff] %v371_v37  ;;  %v374_v41 = vadd.f32 %v492_v40, %v416_v35  ;;  %v365_v42 = vpop.f32.mrb[3].mxu1 }
 0x1d8   :  { %393 = vst [vmem:[%s678_s7] sm:$0xff] %v363_v39  ;;  %v366_v43 = vadd.f32 %v416_v35, %v365_v42 }
 0x1d9   :  { %396 = vst [vmem:[%s678_s7 + $0x18] sm:$0xff] %v374_v41 }
 0x1da   :  { %394 = vst [vmem:[%s678_s7 + $0x8] sm:$0xff] %v366_v43 }
 0x1dc   :  { %v495_v44 = vpop.f32.mrb[4].mxu1 }
 0x1dd   :  { %v387_v45 = vadd.f32 %v495_v44, %v416_v35  ;;  %v378_v46 = vpop.f32.mrb[5].mxu1 }
 0x1de   :  { %v379_v47 = vadd.f32 %v416_v35, %v378_v46  ;;  %v496_v48 = vpop.f32.mrb[6].mxu1 }
 0x1df   :  { %399 = vst [vmem:[%s678_s7 + $0x30] sm:$0xff] %v387_v45  ;;  %v390_v49 = vadd.f32 %v496_v48, %v416_v35  ;;  %v381_v50 = vpop.f32.mrb[7].mxu1 }
 0x1e0   :  { %397 = vst [vmem:[%s678_s7 + $0x20] sm:$0xff] %v379_v47  ;;  %v382_v51 = vadd.f32 %v416_v35, %v381_v50 }
 0x1e1   :  { %400 = vst [vmem:[%s678_s7 + $0x38] sm:$0xff] %v390_v49 }
 0x1e2   :  { %398 = vst [vmem:[%s678_s7 + $0x28] sm:$0xff] %v382_v51 }

// kernel: _padded_forward.1
= control target key start
LH: loop header
LB: loop body
LE: loop exit
PB: predicated region body
PF: predicated region fallthrough
CT: control target
= control target key end

     0   :  { %s671_s3 = inlined_call_operand.vmem [shape: bf16[128,128], index: 3, kind: input, shape index: {}]   ;;  %s672_s0 = inlined_call_operand.vmem [shape: f32[64,128], index: 0, kind: input, shape index: {}]   ;;  %s673_s1 = inlined_call_operand.vmem [shape: f32[1,128], index: 1, kind: input, shape index: {}]   ;;  %s674_s2 = inlined_call_operand.vmem [shape: f32[1,128], index: 2, kind: input, shape index: {}]   ;;  %s675_s5 = inlined_call_operand.vmem [shape: bf16[128,128], index: 5, kind: input, shape index: {}]   ;;  %s676_s4 = inlined_call_operand.vmem [shape: f32[1,128], index: 4, kind: input, shape index: {}]   ;;  %s677_s6 = inlined_call_operand.vmem [shape: f32[1,128], index: 6, kind: input, shape index: {}]   ;;  %s678_s7 = inlined_call_operand.vmem [shape: f32[64,128], index: 7, kind: output, shape index: {}]  }
   0x1   :  { %v497_v0 = vld [vmem:[%s671_s3] sm:$0xff]   ;;  %v498_v1 = vld [vmem:[%s671_s3 + $0x8] sm:$0xff]   ;;  %v499_v2 = vld [vmem:[%s671_s3 + $0x10] sm:$0xff]  }
   0x2   :  { %449 = vmatprep.subr.bf16.mxu0 %v497_v0  ;;  %v500_v3 = vld [vmem:[%s671_s3 + $0x18] sm:$0xff]   ;;  %v27_v4 = vld [vmem:[%s672_s0] sm:$0xff]  ;;  %v28_v5 = vld [vmem:[%s672_s0 + $0x8] sm:$0xff] }
   0x3   :  { %450 = vmatpush3.bf16.msra.mxu0 %v497_v0  ;;  %v405_v6 = vld [vmem:[%s673_s1] ss:$0 sm:$0xff]  ;;  %v29_v11 = vld [vmem:[%s672_s0 + $0x10] sm:$0xff]  ;;  %v30_v12 = vld [vmem:[%s672_s0 + $0x18] sm:$0xff] }
   0x4   :  { %451 = vmatprep.subr.bf16.mxu0 %v498_v1  ;;  %v42_v7 = vmul.f32 %v405_v6, %v27_v4  ;;  %v43_v8 = vmul.f32 %v405_v6, %v28_v5  ;;  %v577_v9 = vld [vmem:[%s674_s2] ss:$0 sm:$0xff]  ;;  %v32_v16 = vld [vmem:[%s672_s0 + $0x28] sm:$0xff]  ;;  %v44_v22 = vmul.f32 %v405_v6, %v29_v11  ;;  %v45_v23 = vmul.f32 %v405_v6, %v30_v12  ;;  %v503_v29 = vld [vmem:[%s671_s3 + $0x30] sm:$0xff]  }
   0x5   :  { %v501_v10 = vld [vmem:[%s671_s3 + $0x20] sm:$0xff]   ;;  %v506_v24 = vld [vmem:[%s675_s5 + $0x8] sm:$0xff]   ;;  %v47_v28 = vmul.f32 %v405_v6, %v32_v16  ;;  %v507_v30 = vld [vmem:[%s675_s5 + $0x10] sm:$0xff]  }
   0x6   :  { %v57_v13 = vadd.f32 %v577_v9, %v42_v7  ;;  %v58_v14 = vadd.f32 %v577_v9, %v43_v8  ;;  %v31_v15 = vld [vmem:[%s672_s0 + $0x20] sm:$0xff]  ;;  %v502_v25 = vld [vmem:[%s671_s3 + $0x28] sm:$0xff]   ;;  %v59_v31 = vadd.f32 %v577_v9, %v44_v22  ;;  %v60_v32 = vadd.f32 %v577_v9, %v45_v23  ;;  %v33_v35 = vld [vmem:[%s672_s0 + $0x30] sm:$0xff] }
   0x7   :  { %452 = vmatpush3.bf16.msra.mxu0 %v498_v1  ;;  %v505_v17 = vld [vmem:[%s675_s5] sm:$0xff]   ;;  %v46_v27 = vmul.f32 %v405_v6, %v31_v15  ;;  %v62_v34 = vadd.f32 %v577_v9, %v47_v28  ;;  %v34_v36 = vld [vmem:[%s672_s0 + $0x38] sm:$0xff]  ;;  %v48_v41 = vmul.f32 %v405_v6, %v33_v35  ;;  %v510_v59 = vld [vmem:[%s675_s5 + $0x28] sm:$0xff]  }
   0x8   :  { %453 = vmatprep.subr.bf16.mxu0 %v499_v2  ;;  %vm65_vm0 = vcmp.ge.f32.partialorder %v57_v13, 0.0  ;;  %vm66_vm1 = vcmp.ge.f32.partialorder %v58_v14, 0.0  ;;  %v73_v18 = vmul.f32 0.2, %v57_v13  ;;  %v74_v19 = vmul.f32 0.2, %v58_v14  ;;  %473 = vmatprep.subr.bf16.mxu1 %v505_v17 }
   0x9   :  { %474 = vmatpush3.bf16.msra.mxu1 %v505_v17  ;;  %v61_v33 = vadd.f32 %v577_v9, %v46_v27  ;;  %v508_v37 = vld [vmem:[%s675_s5 + $0x18] sm:$0xff]   ;;  %v75_v39 = vmul.f32 0.2, %v59_v31  ;;  %v76_v40 = vmul.f32 0.2, %v60_v32  ;;  %v49_v42 = vmul.f32 %v405_v6, %v34_v36  ;;  %v509_v45 = vld [vmem:[%s675_s5 + $0x20] sm:$0xff]  }
   0xa   :  { %v81_v20 = vsel %vm65_vm0, %v57_v13, %v73_v18  ;;  %v82_v21 = vsel %vm66_vm1, %v58_v14, %v74_v19  ;;  %475 = vmatprep.subr.bf16.mxu1 %v506_v24  ;;  %v504_v38 = vld [vmem:[%s671_s3 + $0x38] sm:$0xff]   ;;  %vm67_vm2 = vcmp.ge.f32.partialorder %v59_v31, 0.0  ;;  %vm68_vm3 = vcmp.ge.f32.partialorder %v60_v32, 0.0  ;;  %v511_v60 = vld [vmem:[%s675_s5 + $0x30] sm:$0xff]   ;;  %v407_v62 = vld [vmem:[%s676_s4] ss:$0 sm:$0xff] }
   0xb   :  { %454 = vmatpush3.bf16.msra.mxu0 %v499_v2  ;;  %v89_v26 = vpack.c.bf16 %v82_v21, %v81_v20  ;;  %v77_v43 = vmul.f32 0.2, %v61_v33  ;;  %v78_v44 = vmul.f32 0.2, %v62_v34  ;;  %vm69_vm4 = vcmp.ge.f32.partialorder %v61_v33, 0.0  ;;  %v512_v61 = vld [vmem:[%s675_s5 + $0x38] sm:$0xff]  }
   0xc   :  { %455 = vmatprep.subr.bf16.mxu0 %v500_v3  ;;  %vm70_vm5 = vcmp.ge.f32.partialorder %v62_v34, 0.0  ;;  %v83_v46 = vsel %vm67_vm2, %v59_v31, %v75_v39  ;;  %v84_v47 = vsel %vm68_vm3, %v60_v32, %v76_v40  ;;  %v63_v48 = vadd.f32 %v577_v9, %v48_v41  ;;  %v416_v35 = vld [vmem:[%s677_s6] ss:$0 sm:$0xff] }
   0xd   :  { %465 = vmatprep.mubr.bf16.mxu0 %v89_v26  ;;  %476 = vmatpush3.bf16.msra.mxu1 %v506_v24  ;;  %v64_v49 = vadd.f32 %v577_v9, %v49_v42  ;;  %v85_v50 = vsel %vm69_vm4, %v61_v33, %v77_v43  ;;  %v86_v51 = vsel %vm70_vm5, %v62_v34, %v78_v44 }
   0xe   :  { %477 = vmatprep.subr.bf16.mxu1 %v507_v30  ;;  %v90_v52 = vpack.c.bf16 %v84_v47, %v83_v46  ;;  %v91_v53 = vpack.c.bf16 %v86_v51, %v85_v50  ;;  %v79_v54 = vmul.f32 0.2, %v63_v48  ;;  %vm71_vm6 = vcmp.ge.f32.partialorder %v63_v48, 0.0 }
   0xf   :  { %456 = vmatpush3.bf16.msra.mxu0 %v500_v3  ;;  %v80_v55 = vmul.f32 0.2, %v64_v49  ;;  %vm72_vm7 = vcmp.ge.f32.partialorder %v64_v49, 0.0 }
  0x10   :  { %457 = vmatprep.subr.bf16.mxu0 %v501_v10  ;;  %v87_v56 = vsel %vm71_vm6, %v63_v48, %v79_v54 }
  0x11   :  { %478 = vmatpush3.bf16.msra.mxu1 %v507_v30  ;;  %v88_v57 = vsel %vm72_vm7, %v64_v49, %v80_v55 }
  0x12   :  { %479 = vmatprep.subr.bf16.mxu1 %v508_v37  ;;  %v92_v58 = vpack.c.bf16 %v88_v57, %v87_v56 }
  0x13   :  { %458 = vmatpush3.bf16.msra.mxu0 %v501_v10 }
  0x14   :  { %459 = vmatprep.subr.bf16.mxu0 %v502_v25 }
  0x15   :  { %480 = vmatpush3.bf16.msra.mxu1 %v508_v37 }
  0x16   :  { %481 = vmatprep.subr.bf16.mxu1 %v509_v45 }
  0x17   :  { %460 = vmatpush3.bf16.msra.mxu0 %v502_v25 }
  0x18   :  { %461 = vmatprep.subr.bf16.mxu0 %v503_v29 }
  0x19   :  { %482 = vmatpush3.bf16.msra.mxu1 %v509_v45 }
  0x1a   :  { %483 = vmatprep.subr.bf16.mxu1 %v510_v59 }
  0x1b   :  { %462 = vmatpush3.bf16.msra.mxu0 %v503_v29 }
  0x1c   :  { %463 = vmatprep.subr.bf16.mxu0 %v504_v38 }
  0x1d   :  { %484 = vmatpush3.bf16.msra.mxu1 %v510_v59 }
  0x1e   :  { %485 = vmatprep.subr.bf16.mxu1 %v511_v60 }
  0x1f   :  { %464 = vmatpush3.bf16.msra.mxu0 %v504_v38 }
  0x21   :  { %486 = vmatpush3.bf16.msra.mxu1 %v511_v60 }
  0x22   :  { %466 = vmatmul.mubr.bf16.vlgmr.msra.gmra.mrb[0].mxu0 %v90_v52  ;;  %487 = vmatprep.subr.bf16.mxu1 %v512_v61 }
  0x23   :  { %469 = vmatprep.mubr.bf16.mxu0 %v91_v53 }
  0x25   :  { %488 = vmatpush3.bf16.msra.mxu1 %v512_v61 }
  0x2a   :  { %470 = vmatmul.mubr.bf16.gmra.mrb[4].mxu0 %v92_v58 }
  0xf5   :  { %v467_v63 = vpop.f32.mrb[0].mxu0 }
  0xf6   :  { %v207_v0 = vadd.f32 %v467_v63, %v407_v62  ;;  %v198_v1 = vpop.f32.mrb[1].mxu0 }
  0xf7   :  { %v199_v2 = vadd.f32 %v407_v62, %v198_v1  ;;  %v468_v3 = vpop.f32.mrb[2].mxu0 }
  0xf8   :  { %v239_v4 = vmul.f32 0.2, %v207_v0  ;;  %v210_v5 = vadd.f32 %v468_v3, %v407_v62  ;;  %v201_v6 = vpop.f32.mrb[3].mxu0  ;;  %vm231_vm8 = vcmp.ge.f32.partialorder %v207_v0, 0.0 }
  0xf9   :  { %v237_v7 = vmul.f32 0.2, %v199_v2  ;;  %v202_v8 = vadd.f32 %v407_v62, %v201_v6  ;;  %vm229_vm10 = vcmp.ge.f32.partialorder %v199_v2, 0.0 }
  0xfa   :  { %vm232_vm9 = vcmp.ge.f32.partialorder %v210_v5, 0.0  ;;  %v240_v9 = vmul.f32 0.2, %v210_v5  ;;  %v247_v11 = vsel %vm231_vm8, %v207_v0, %v239_v4 }
  0xfb   :  { %v238_v10 = vmul.f32 0.2, %v202_v8  ;;  %vm230_vm11 = vcmp.ge.f32.partialorder %v202_v8, 0.0  ;;  %v245_v14 = vsel %vm229_vm10, %v199_v2, %v237_v7 }
  0xfc   :  { %v248_v12 = vsel %vm232_vm9, %v210_v5, %v240_v9 }
  0xfd   :  { %v471_v13 = vpop.f32.mrb[4].mxu0  ;;  %v246_v15 = vsel %vm230_vm11, %v202_v8, %v238_v10  ;;  %v254_v16 = vpack.c.bf16 %v248_v12, %v247_v11 }
  0xfe   :  { %v223_v17 = vadd.f32 %v471_v13, %v407_v62  ;;  %v214_v18 = vpop.f32.mrb[5].mxu0  ;;  %v253_v19 = vpack.c.bf16 %v246_v15, %v245_v14 }
  0xff   :  { %v215_v20 = vadd.f32 %v407_v62, %v214_v18  ;;  %v472_v21 = vpop.f32.mrb[6].mxu0 }
 0x100   :  { %v243_v22 = vmul.f32 0.2, %v223_v17  ;;  %v226_v23 = vadd.f32 %v472_v21, %v407_v62  ;;  %v217_v24 = vpop.f32.mrb[7].mxu0  ;;  %489 = vmatprep.mubr.bf16.mxu1 %v253_v19  ;;  %vm235_vm12 = vcmp.ge.f32.partialorder %v223_v17, 0.0 }
 0x101   :  { %v241_v25 = vmul.f32 0.2, %v215_v20  ;;  %v218_v26 = vadd.f32 %v407_v62, %v217_v24  ;;  %490 = vmatmul.mubr.bf16.vlgmr.msra.gmra.mrb[0].mxu1 %v254_v16  ;;  %vm233_vm13 = vcmp.ge.f32.partialorder %v215_v20, 0.0 }
 0x102   :  { %vm236_vm14 = vcmp.ge.f32.partialorder %v226_v23, 0.0  ;;  %v244_v27 = vmul.f32 0.2, %v226_v23  ;;  %v251_v29 = vsel %vm235_vm12, %v223_v17, %v243_v22 }
 0x103   :  { %vm234_vm15 = vcmp.ge.f32.partialorder %v218_v26, 0.0  ;;  %v242_v28 = vmul.f32 0.2, %v218_v26  ;;  %v249_v31 = vsel %vm233_vm13, %v215_v20, %v241_v25 }
 0x104   :  { %v252_v30 = vsel %vm236_vm14, %v226_v23, %v244_v27 }
 0x105   :  { %v250_v32 = vsel %vm234_vm15, %v218_v26, %v242_v28  ;;  %v256_v33 = vpack.c.bf16 %v252_v30, %v251_v29 }
 0x106   :  { %v255_v34 = vpack.c.bf16 %v250_v32, %v249_v31 }
 0x108   :  { %493 = vmatprep.mubr.bf16.mxu1 %v255_v34 }
 0x109   :  { %494 = vmatmul.mubr.bf16.gmra.mrb[4].mxu1 %v256_v33 }
 0x1d4   :  { %v491_v36 = vpop.f32.mrb[0].mxu1 }
 0x1d5   :  { %v371_v37 = vadd.f32 %v491_v36, %v416_v35  ;;  %v362_v38 = vpop.f32.mrb[1].mxu1 }
 0x1d6   :  { %v363_v39 = vadd.f32 %v416_v35, %v362_v38  ;;  %v492_v40 = vpop.f32.mrb[2].mxu1 }
 0x1d7   :  { %395 = vst [vmem:[%s678_s7 + $0x10] sm:$0xff] %v371_v37  ;;  %v374_v41 = vadd.f32 %v492_v40, %v416_v35  ;;  %v365_v42 = vpop.f32.mrb[3].mxu1 }
 0x1d8   :  { %393 = vst [vmem:[%s678_s7] sm:$0xff] %v363_v39  ;;  %v366_v43 = vadd.f32 %v416_v35, %v365_v42 }
 0x1d9   :  { %396 = vst [vmem:[%s678_s7 + $0x18] sm:$0xff] %v374_v41 }
 0x1da   :  { %394 = vst [vmem:[%s678_s7 + $0x8] sm:$0xff] %v366_v43 }
 0x1dc   :  { %v495_v44 = vpop.f32.mrb[4].mxu1 }
 0x1dd   :  { %v387_v45 = vadd.f32 %v495_v44, %v416_v35  ;;  %v378_v46 = vpop.f32.mrb[5].mxu1 }
 0x1de   :  { %v379_v47 = vadd.f32 %v416_v35, %v378_v46  ;;  %v496_v48 = vpop.f32.mrb[6].mxu1 }
 0x1df   :  { %399 = vst [vmem:[%s678_s7 + $0x30] sm:$0xff] %v387_v45  ;;  %v390_v49 = vadd.f32 %v496_v48, %v416_v35  ;;  %v381_v50 = vpop.f32.mrb[7].mxu1 }
 0x1e0   :  { %397 = vst [vmem:[%s678_s7 + $0x20] sm:$0xff] %v379_v47  ;;  %v382_v51 = vadd.f32 %v416_v35, %v381_v50 }
 0x1e1   :  { %400 = vst [vmem:[%s678_s7 + $0x38] sm:$0xff] %v390_v49 }
 0x1e2   :  { %398 = vst [vmem:[%s678_s7 + $0x28] sm:$0xff] %v382_v51 }

</bundles_post_ra>
